<compile_context>
chip_gen: v7x
topology: tpu7x:2x2x1
jax: 0.10.0
libtpu: 0.0.40
codegen_flags: <defaults>
</compile_context>

<pallas_src>
import functools

import jax
import jax.numpy as jnp
from jax.experimental import pallas as pl
from jax.experimental.pallas import tpu as pltpu

BN_EPS = 1e-5
LANE = 128
SUBLANE = 8
ADJ_DTYPE = jnp.int8       # dense adjacency storage (exact for edge multiplicities <= 127)
AGG_DTYPE = jnp.bfloat16   # MXU operand dtype for the aggregation matmul


def _round_up(v, m):
    return (v + m - 1) // m * m


# --------------------------------------------------------------------------------------
# Kernels
# --------------------------------------------------------------------------------------
def _gin_layer_kernel(xfull_ref, xtile_ref, a_ref, w_ref, h_ref, stats_ref, acc_ref, *,
                      tm, n_real, in_p, hid_p, out_p):
    """One GIN layer (eps=0) + MLP(Linear->ReLU->Linear) + outer ReLU, k-tiled aggregation.

    xfull_ref : [TK, IN_P]  bf16  streamed node-feature tile (contraction operand)
    xtile_ref : [TM, IN_P]  f32   row tile of node features (exact self term)
    a_ref     : [TM, TK]    int8  adjacency tile, A[i, j] = #edges j -> i
    w_ref     : [IN_P+8+HID_P+8, PACKW] f32  packed (W_a | b_a | W_b | b_b)
    h_ref     : [TM, OUT_P] bf16  pre-BN, post-ReLU activations for this row tile
    stats_ref : [8, OUT_P]  f32   row 0: masked column sum, row 1: masked column sum-of-squares
    acc_ref   : [TM, IN_P]  f32   aggregation accumulator (scratch)
    """
    i = pl.program_id(0)
    k = pl.program_id(1)
    nk = pl.num_programs(1)

    @pl.when(k == 0)
    def _():
        acc_ref[...] = jnp.zeros_like(acc_ref)

    # neighborhood sum: A[row_tile, k_tile] @ x[k_tile]  (int8 upcast in-register, bf16 MXU)
    acc_ref[...] += jnp.dot(a_ref[...].astype(AGG_DTYPE), xfull_ref[...],
                            preferred_element_type=jnp.float32)

    @pl.when(k == nk - 1)
    def _():
        # GIN eps = 0: self term added once after the reduction
        m = acc_ref[...] + xtile_ref[...]

        # unpack the MLP parameters with static (lane/sublane aligned) slices
        w_a = w_ref[0:in_p, 0:hid_p]
        b_a = w_ref[in_p:in_p + 1, 0:hid_p]
        w_b = w_ref[in_p + 8:in_p + 8 + hid_p, 0:out_p]
        b_b = w_ref[in_p + 8 + hid_p:in_p + 9 + hid_p, 0:out_p]

        h = jnp.maximum(jnp.dot(m, w_a, preferred_element_type=jnp.float32) + b_a, 0.0)
        h = jnp.maximum(jnp.dot(h, w_b, preferred_element_type=jnp.float32) + b_b, 0.0)
        h_ref[...] = h.astype(h_ref.dtype)   # bf16 internal activation

        # masked partial BatchNorm statistics (exclude padded node rows); the select is
        # free filler in this HBM-bound kernel.  Rows 2..7 of stats are never read.
        row = jax.lax.broadcasted_iota(jnp.int32, (tm, 1), 0) + i * tm
        hm = jnp.where(row < n_real, h, 0.0)
        stats_ref[0:1, :] = jnp.sum(hm, axis=0, keepdims=True)
        stats_ref[1:2, :] = jnp.sum(hm * hm, axis=0, keepdims=True)


def _bn_apply_kernel(h_ref, ss_ref, o_ref, obf_ref):
    """y = x * scale + shift; also emits the bf16 copy consumed by the next layer."""
    scale = ss_ref[0:1, :]
    shift = ss_ref[1:2, :]
    y = h_ref[...].astype(jnp.float32) * scale + shift
    o_ref[...] = y
    obf_ref[...] = y.astype(obf_ref.dtype)


# --------------------------------------------------------------------------------------
# pallas_call wrappers
# --------------------------------------------------------------------------------------
def _gin_layer(x_full_bf, x_tiled_f32, adj_i8, w_pack, *, tm, tk, n_real, in_p, hid_p, out_p,
               grid_t, grid_k, np_, vmem_limit):
    kernel = functools.partial(_gin_layer_kernel, tm=tm, n_real=n_real,
                               in_p=in_p, hid_p=hid_p, out_p=out_p)
    flops = 2 * np_ * np_ * in_p + 2 * np_ * in_p * hid_p + 2 * np_ * hid_p * out_p
    bytes_acc = (np_ * np_ * 1                      # int8 adjacency
                 + np_ * in_p * (2 + 4)             # bf16 stream + f32 self-term tiles
                 + np_ * out_p * 2                  # bf16 activation out
                 + grid_t * 8 * out_p * 4           # stats out
                 + w_pack.size * 4)                 # packed weights
    return pl.pallas_call(
        kernel,
        out_shape=(jax.ShapeDtypeStruct((np_, out_p), jnp.bfloat16),
                   jax.ShapeDtypeStruct((grid_t * 8, out_p), jnp.float32)),
        grid=(grid_t, grid_k),
        in_specs=[
            pl.BlockSpec((tk, in_p), lambda i, k: (k, 0)),    # streamed features (bf16)
            pl.BlockSpec((tm, in_p), lambda i, k: (i, 0)),    # self-term row tile (f32)
            pl.BlockSpec((tm, tk), lambda i, k: (i, k)),      # int8 adjacency tile
            pl.BlockSpec(w_pack.shape, lambda i, k: (0, 0)),  # packed MLP params (resident)
        ],
        out_specs=(
            pl.BlockSpec((tm, out_p), lambda i, k: (i, 0)),   # pre-BN activations (bf16)
            pl.BlockSpec((8, out_p), lambda i, k: (i, 0)),    # per-tile partial BN stats
        ),
        scratch_shapes=[pltpu.VMEM((tm, in_p), jnp.float32)],
        compiler_params=pltpu.CompilerParams(
            dimension_semantics=("parallel", "arbitrary"),
            vmem_limit_bytes=vmem_limit),
        cost_estimate=pl.CostEstimate(flops=int(flops), transcendentals=0,
                                      bytes_accessed=int(bytes_acc)),
    )(x_full_bf, x_tiled_f32, adj_i8, w_pack)


def _bn_apply(h_pre_bf, scale_shift, *, tm, grid_t, np_, width, vmem_limit):
    return pl.pallas_call(
        _bn_apply_kernel,
        out_shape=(jax.ShapeDtypeStruct((np_, width), jnp.float32),
                   jax.ShapeDtypeStruct((np_, width), jnp.bfloat16)),
        grid=(grid_t,),
        in_specs=[pl.BlockSpec((tm, width), lambda i: (i, 0)),
                  pl.BlockSpec((8, width), lambda i: (0, 0))],
        out_specs=(pl.BlockSpec((tm, width), lambda i: (i, 0)),
                   pl.BlockSpec((tm, width), lambda i: (i, 0))),
        compiler_params=pltpu.CompilerParams(
            dimension_semantics=("parallel",),
            vmem_limit_bytes=vmem_limit),
    )(h_pre_bf, scale_shift)


def _finish_stats(stats, gamma_p, beta_p, n_real):
    """Tiny wrapper-side reduction: per-tile partial sums -> BN scale/shift slab (8, width)."""
    width = stats.shape[-1]
    st = stats.reshape(-1, 8, width)
    total = jnp.sum(st[:, 0, :], axis=0)
    total_sq = jnp.sum(st[:, 1, :], axis=0)
    mean = total / n_real
    var = jnp.maximum(total_sq / n_real - mean * mean, 0.0)   # biased (training-mode) variance
    scale = gamma_p * jax.lax.rsqrt(var + BN_EPS)
    shift = beta_p - mean * scale
    return jnp.zeros((8, width), jnp.float32).at[0].set(scale).at[1].set(shift)


# --------------------------------------------------------------------------------------
# Forward pass
# --------------------------------------------------------------------------------------
def gin_node_weight_encoder(x, edge_index, params):
    """x: [N, num_features] f32; edge_index: [2, E] int32 (row 0 = source, row 1 = target).

    params = (w1, b1, w2, b2, g1, be1, w3, b3, w4, b4, g2, be2)
      LinearCustom convention: out = x @ W + b  (W is [in, out]).
    Returns (out [N, 2-or-3], hid_x_rep [N, dim]) like the PyTorch module.
    """
    (w1, b1, w2, b2, g1, be1, w3, b3, w4, b4, g2, be2) = params
    n_real, f = x.shape
    dim = w1.shape[1]
    out_dim = w4.shape[1]

    # padded (lane/sublane dense) sizes
    in_p = _round_up(f, LANE)
    hid_p = _round_up(dim, LANE)
    out_p = _round_up(out_dim, LANE)

    # Row / contraction tiles.  k-tiling bounds VMEM independent of N (fits v7x's 64 MiB);
    # 512-wide tiles keep the int8 adjacency DMAs long (near the HBM roofline on v5e/v6e).
    if n_real <= 512:
        tm = _round_up(n_real, 32)        # 32 = int8 sublane packing granularity
    else:
        tm = 512
    tk = tm
    np_ = _round_up(n_real, tm)
    grid_t = np_ // tm
    grid_k = np_ // tk

    def pad2(a, rows, cols):
        return jnp.pad(a, ((0, rows - a.shape[0]), (0, cols - a.shape[1])))

    # node features (pad rows/cols with zeros); single bf16 copy for the contraction operand
    x_p = pad2(x.astype(jnp.float32), np_, in_p)
    x_bf = x_p.astype(AGG_DTYPE)

    # dense adjacency A[dst, src] += 1, scattered directly into int8 (no f32 intermediate)
    adj = (jnp.zeros((np_, np_), ADJ_DTYPE)
           .at[edge_index[1], edge_index[0]]
           .add(jnp.ones((edge_index.shape[1],), ADJ_DTYPE)))

    # pack each layer's (W_a, b_a, W_b, b_b) into a single lane-dense f32 slab
    def pack_mlp(wa, ba, wb, bb, inp, hidp, outp):
        width = max(hidp, outp)
        rows = inp + 8 + hidp + 8
        p = jnp.zeros((rows, width), jnp.float32)
        p = p.at[:wa.shape[0], :wa.shape[1]].set(wa)
        p = p.at[inp, :ba.shape[-1]].set(ba.reshape(-1))
        p = p.at[inp + 8:inp + 8 + wb.shape[0], :wb.shape[1]].set(wb)
        p = p.at[inp + 8 + hidp, :bb.shape[-1]].set(bb.reshape(-1))
        return p

    w_pack1 = pack_mlp(w1, b1, w2, b2, in_p, hid_p, hid_p)
    w_pack2 = pack_mlp(w3, b3, w4, b4, hid_p, hid_p, out_p)

    # BN affine params, padded with zeros (padded columns stay exactly zero after BN)
    g1p = jnp.zeros((hid_p,), jnp.float32).at[:dim].set(g1.reshape(-1))
    be1p = jnp.zeros((hid_p,), jnp.float32).at[:dim].set(be1.reshape(-1))
    g2p = jnp.zeros((out_p,), jnp.float32).at[:out_dim].set(g2.reshape(-1))
    be2p = jnp.zeros((out_p,), jnp.float32).at[:out_dim].set(be2.reshape(-1))

    # deterministic VMEM budget: double-buffered streamed tiles + residents + scratch,
    # capped at 40 MiB (headroom within v7x's 64 MiB physical VMEM)
    def vmem_est(in_w, out_w, pack_shape):
        return (2 * tk * in_w * 2 +                  # bf16 streamed feature tile
                2 * tm * in_w * 4 +                  # f32 self-term tile
                2 * tm * tk * 1 +                    # int8 adjacency tile
                2 * pack_shape[0] * pack_shape[1] * 4 +
                2 * tm * out_w * 2 +                 # bf16 activation tile out
                2 * 8 * out_w * 4 +                  # stats out
                tm * in_w * 4)                       # f32 accumulator scratch
    est = max(vmem_est(in_p, hid_p, w_pack1.shape), vmem_est(hid_p, out_p, w_pack2.shape))
    vlim = int(min(max(4 * est, 16 * 2**20), 40 * 2**20))

    # ---- layer 1: conv1 + relu (pre-BN) + partial BN stats ----
    h_pre, stats1 = _gin_layer(x_bf, x_p, adj, w_pack1,
                               tm=tm, tk=tk, n_real=n_real,
                               in_p=in_p, hid_p=hid_p, out_p=hid_p,
                               grid_t=grid_t, grid_k=grid_k, np_=np_, vmem_limit=vlim)
    ss1 = _finish_stats(stats1, g1p, be1p, n_real)
    hid, hid_bf = _bn_apply(h_pre, ss1, tm=tm, grid_t=grid_t, np_=np_, width=hid_p,
                            vmem_limit=vlim)

    # ---- layer 2: conv5 + relu (pre-BN) + partial BN stats ----
    z_pre, stats2 = _gin_layer(hid_bf, hid, adj, w_pack2,
                               tm=tm, tk=tk, n_real=n_real,
                               in_p=hid_p, hid_p=hid_p, out_p=out_p,
                               grid_t=grid_t, grid_k=grid_k, np_=np_, vmem_limit=vlim)
    ss2 = _finish_stats(stats2, g2p, be2p, n_real)
    out_pad, _ = _bn_apply(z_pre, ss2, tm=tm, grid_t=grid_t, np_=np_, width=out_p,
                           vmem_limit=vlim)

    return out_pad[:n_real, :out_dim], hid[:n_real, :dim]


# --------------------------------------------------------------------------------------
# Parameter construction (matches LinearCustom x @ W + b convention, BN defaults)
# --------------------------------------------------------------------------------------
def make_params(key, num_features, dim, out_dim):
    ks = jax.random.split(key, 4)

    def lin(k, fan_in, fan_out):
        bound = 1.0 / jnp.sqrt(fan_in)
        kw, kb = jax.random.split(k)
        w = jax.random.uniform(kw, (fan_in, fan_out), jnp.float32, -bound, bound)
        b = jax.random.uniform(kb, (1, fan_out), jnp.float32, -bound, bound)
        return w, b

    w1, b1 = lin(ks[0], num_features, dim)
    w2, b2 = lin(ks[1], dim, dim)
    w3, b3 = lin(ks[2], dim, dim)
    w4, b4 = lin(ks[3], dim, out_dim)
    g1 = jnp.ones((1, dim), jnp.float32)
    be1 = jnp.zeros((1, dim), jnp.float32)
    g2 = jnp.ones((1, out_dim), jnp.float32)
    be2 = jnp.zeros((1, out_dim), jnp.float32)
    return (w1, b1, w2, b2, g1, be1, w3, b3, w4, b4, g2, be2)


if __name__ == "__main__":
    key = jax.random.PRNGKey(0)
    k_x, k_e, k_p = jax.random.split(key, 3)

    N = 16               # nodes
    num_features = 4
    dim = 32
    out_dim = 2          # add_mask = False -> BatchNorm1d(2)
    E = 40               # edges

    x = jax.random.normal(k_x, (N, num_features), jnp.float32)
    edge_index = jax.random.randint(k_e, (2, E), 0, N, jnp.int32)
    params = make_params(k_p, num_features, dim, out_dim)

    fwd = jax.jit(gin_node_weight_encoder)
    out, hid = fwd(x, edge_index, params)
    jax.block_until_ready((out, hid))

    assert out.shape == (N, out_dim), out.shape
    assert hid.shape == (N, dim), hid.shape
    assert bool(jnp.all(jnp.isfinite(out))) and bool(jnp.all(jnp.isfinite(hid)))
    print("KERNEL_OK")
</pallas_src>

<mosaic_0001>
module attributes {stable_mosaic.version = 11 : i64} {
  func.func @_gin_layer_kernel(%arg0: i32, %arg1: i32, %arg2: memref<32x128xbf16, #tpu.memory_space<vmem>>, %arg3: memref<32x128xf32, #tpu.memory_space<vmem>>, %arg4: memref<32x32xi8, #tpu.memory_space<vmem>>, %arg5: memref<272x128xf32, #tpu.memory_space<vmem>>, %arg6: memref<32x128xbf16, #tpu.memory_space<vmem>>, %arg7: memref<8x128xf32, #tpu.memory_space<vmem>>, %arg8: memref<32x128xf32, #tpu.memory_space<vmem>>) attributes {dimension_semantics = [#tpu.dimension_semantics<parallel>, #tpu.dimension_semantics<arbitrary>], iteration_bounds = array<i64: 1, 1>, scalar_prefetch = 0 : i64, scratch_operands = 1 : i64, tpu.core_type = #tpu.core_type<tc>, window_params = [{transform_indices = @transform_0, window_bounds = array<i64: 32, 128>}, {transform_indices = @transform_1, window_bounds = array<i64: 32, 128>}, {transform_indices = @transform_2, window_bounds = array<i64: 32, 32>}, {pipeline_mode = #tpu.pipeline_mode<synchronous>, transform_indices = @transform_3, window_bounds = array<i64: 272, 128>}, {transform_indices = @transform_4, window_bounds = array<i64: 32, 128>}, {transform_indices = @transform_5, window_bounds = array<i64: 8, 128>}]} {
    %c0_i32 = arith.constant 0 : i32
    %0 = arith.cmpi eq, %arg1, %c0_i32 : i32
    %1 = arith.extui %0 : i1 to i32
    %c0_i32_0 = arith.constant 0 : i32
    %2 = arith.cmpi ne, %1, %c0_i32_0 : i32
    scf.if %2 {
      %cst_10 = arith.constant 0.000000e+00 : f32
      %13 = vector.broadcast %cst_10 : f32 to vector<32x128xf32>
      %c0_11 = arith.constant 0 : index
      %c0_12 = arith.constant 0 : index
      %14 = vector.load %arg8[%c0_11, %c0_12] : memref<32x128xf32, #tpu.memory_space<vmem>>, vector<32x128xf32>
      tpu.vector_store %arg8[%c0_11, %c0_12], %13 {strides = array<i32>} : memref<32x128xf32, #tpu.memory_space<vmem>>, vector<32x128xf32>,
    } else {
    }
    %c0 = arith.constant 0 : index
    %c0_1 = arith.constant 0 : index
    %3 = vector.load %arg8[%c0, %c0_1] : memref<32x128xf32, #tpu.memory_space<vmem>>, vector<32x128xf32>
    %c0_2 = arith.constant 0 : index
    %c0_3 = arith.constant 0 : index
    %4 = vector.load %arg4[%c0_2, %c0_3] : memref<32x32xi8, #tpu.memory_space<vmem>>, vector<32x32xi8>
    %5 = arith.sitofp %4 : vector<32x32xi8> to vector<32x32xbf16>
    %c0_4 = arith.constant 0 : index
    %c0_5 = arith.constant 0 : index
    %6 = vector.load %arg2[%c0_4, %c0_5] : memref<32x128xbf16, #tpu.memory_space<vmem>>, vector<32x128xbf16>
    %cst = arith.constant dense<0.000000e+00> : vector<32x128xf32>
    %7 = tpu.matmul %5, %6, %cst {dimension_numbers = #tpu.dot_dimension_numbers<[1], [0], [0], [1], [0, 0, 1, 1], [], []>} : vector<32x32xbf16>, vector<32x128xbf16>, vector<32x128xf32> -> vector<32x128xf32>
    %8 = arith.addf %3, %7 : vector<32x128xf32>
    %c0_6 = arith.constant 0 : index
    %c0_7 = arith.constant 0 : index
    %9 = vector.load %arg8[%c0_6, %c0_7] : memref<32x128xf32, #tpu.memory_space<vmem>>, vector<32x128xf32>
    tpu.vector_store %arg8[%c0_6, %c0_7], %8 {strides = array<i32>} : memref<32x128xf32, #tpu.memory_space<vmem>>, vector<32x128xf32>,
    %c0_i32_8 = arith.constant 0 : i32
    %10 = arith.cmpi eq, %arg1, %c0_i32_8 : i32
    %11 = arith.extui %10 : i1 to i32
    %c0_i32_9 = arith.constant 0 : i32
    %12 = arith.cmpi ne, %11, %c0_i32_9 : i32
    scf.if %12 {
      %c0_10 = arith.constant 0 : index
      %c0_11 = arith.constant 0 : index
      %13 = vector.load %arg8[%c0_10, %c0_11] : memref<32x128xf32, #tpu.memory_space<vmem>>, vector<32x128xf32>
      %c0_12 = arith.constant 0 : index
      %c0_13 = arith.constant 0 : index
      %14 = vector.load %arg3[%c0_12, %c0_13] : memref<32x128xf32, #tpu.memory_space<vmem>>, vector<32x128xf32>
      %15 = arith.addf %13, %14 : vector<32x128xf32>
      %c0_14 = arith.constant 0 : index
      %c0_15 = arith.constant 0 : index
      %16 = vector.load %arg5[%c0_14, %c0_15] : memref<272x128xf32, #tpu.memory_space<vmem>>, vector<128x128xf32>
      %c128 = arith.constant 128 : index
      %c0_16 = arith.constant 0 : index
      %17 = vector.load %arg5[%c128, %c0_16] : memref<272x128xf32, #tpu.memory_space<vmem>>, vector<1x128xf32>
      %c136 = arith.constant 136 : index
      %c0_17 = arith.constant 0 : index
      %18 = vector.load %arg5[%c136, %c0_17] : memref<272x128xf32, #tpu.memory_space<vmem>>, vector<128x128xf32>
      %c264 = arith.constant 264 : index
      %c0_18 = arith.constant 0 : index
      %19 = vector.load %arg5[%c264, %c0_18] : memref<272x128xf32, #tpu.memory_space<vmem>>, vector<1x128xf32>
      %cst_19 = arith.constant dense<0.000000e+00> : vector<32x128xf32>
      %20 = tpu.matmul %15, %16, %cst_19 {dimension_numbers = #tpu.dot_dimension_numbers<[1], [0], [0], [1], [0, 0, 1, 1], [], []>} : vector<32x128xf32>, vector<128x128xf32>, vector<32x128xf32> -> vector<32x128xf32>
      %21 = vector.broadcast %17 : vector<1x128xf32> to vector<32x128xf32>
      %22 = arith.addf %20, %21 : vector<32x128xf32>
      %cst_20 = arith.constant 0.000000e+00 : f32
      %23 = vector.broadcast %cst_20 : f32 to vector<32x128xf32>
      %24 = arith.maximumf %22, %23 : vector<32x128xf32>
      %cst_21 = arith.constant dense<0.000000e+00> : vector<32x128xf32>
      %25 = tpu.matmul %24, %18, %cst_21 {dimension_numbers = #tpu.dot_dimension_numbers<[1], [0], [0], [1], [0, 0, 1, 1], [], []>} : vector<32x128xf32>, vector<128x128xf32>, vector<32x128xf32> -> vector<32x128xf32>
      %26 = vector.broadcast %19 : vector<1x128xf32> to vector<32x128xf32>
      %27 = arith.addf %25, %26 : vector<32x128xf32>
      %cst_22 = arith.constant 0.000000e+00 : f32
      %28 = vector.broadcast %cst_22 : f32 to vector<32x128xf32>
      %29 = arith.maximumf %27, %28 : vector<32x128xf32>
      %30 = arith.truncf %29 : vector<32x128xf32> to vector<32x128xbf16>
      %c0_23 = arith.constant 0 : index
      %c0_24 = arith.constant 0 : index
      %31 = vector.load %arg6[%c0_23, %c0_24] : memref<32x128xbf16, #tpu.memory_space<vmem>>, vector<32x128xbf16>
      tpu.vector_store %arg6[%c0_23, %c0_24], %30 {strides = array<i32>} : memref<32x128xbf16, #tpu.memory_space<vmem>>, vector<32x128xbf16>,
      %32 = tpu.iota {dimensions = array<i32: 0>} : vector<32x1xi32>
      %c32_i32 = arith.constant 32 : i32
      %33 = arith.muli %arg0, %c32_i32 : i32
      %34 = vector.broadcast %33 : i32 to vector<32x1xi32>
      %35 = arith.addi %32, %34 : vector<32x1xi32>
      %c16_i32 = arith.constant 16 : i32
      %36 = vector.broadcast %c16_i32 : i32 to vector<32x1xi32>
      %37 = arith.cmpi slt, %35, %36 : vector<32x1xi32>
      %cst_25 = arith.constant 0.000000e+00 : f32
      %38 = vector.shape_cast %37 : vector<32x1xi1> to vector<32x1xi1>
      %39 = vector.broadcast %38 : vector<32x1xi1> to vector<32x128xi1>
      %40 = vector.broadcast %cst_25 : f32 to vector<32x128xf32>
      %41 = arith.select %39, %29, %40 : vector<32x128xi1>, vector<32x128xf32>
      %cst_26 = arith.constant dense<0.000000e+00> : vector<128xf32>
      %42 = vector.multi_reduction <add>, %41, %cst_26 [0] : vector<32x128xf32> to vector<128xf32>
      %43 = vector.shape_cast %42 : vector<128xf32> to vector<1x128xf32>
      %c0_27 = arith.constant 0 : index
      %c0_28 = arith.constant 0 : index
      %44 = vector.load %arg7[%c0_27, %c0_28] : memref<8x128xf32, #tpu.memory_space<vmem>>, vector<1x128xf32>
      tpu.vector_store %arg7[%c0_27, %c0_28], %43 {strides = array<i32>} : memref<8x128xf32, #tpu.memory_space<vmem>>, vector<1x128xf32>,
      %45 = arith.mulf %41, %41 : vector<32x128xf32>
      %cst_29 = arith.constant dense<0.000000e+00> : vector<128xf32>
      %46 = vector.multi_reduction <add>, %45, %cst_29 [0] : vector<32x128xf32> to vector<128xf32>
      %47 = vector.shape_cast %46 : vector<128xf32> to vector<1x128xf32>
      %c1 = arith.constant 1 : index
      %c0_30 = arith.constant 0 : index
      %48 = vector.load %arg7[%c1, %c0_30] : memref<8x128xf32, #tpu.memory_space<vmem>>, vector<1x128xf32>
      tpu.vector_store %arg7[%c1, %c0_30], %47 {strides = array<i32>} : memref<8x128xf32, #tpu.memory_space<vmem>>, vector<1x128xf32>,
    } else {
    }
    return
  }
  func.func @transform_0(%arg0: i32, %arg1: i32) -> (i32, i32) {
    %c0_i32 = arith.constant 0 : i32
    %c0_i32_0 = arith.constant 0 : i32
    return %arg1, %c0_i32 : i32, i32
  }
  func.func @transform_1(%arg0: i32, %arg1: i32) -> (i32, i32) {
    %c0_i32 = arith.constant 0 : i32
    %c0_i32_0 = arith.constant 0 : i32
    return %arg0, %c0_i32 : i32, i32
  }
  func.func @transform_2(%arg0: i32, %arg1: i32) -> (i32, i32) {
    %c0_i32 = arith.constant 0 : i32
    return %arg0, %arg1 : i32, i32
  }
  func.func @transform_3(%arg0: i32, %arg1: i32) -> (i32, i32) {
    %c0_i32 = arith.constant 0 : i32
    %c0_i32_0 = arith.constant 0 : i32
    %c0_i32_1 = arith.constant 0 : i32
    return %c0_i32, %c0_i32_0 : i32, i32
  }
  func.func @transform_4(%arg0: i32, %arg1: i32) -> (i32, i32) {
    %c0_i32 = arith.constant 0 : i32
    %c0_i32_0 = arith.constant 0 : i32
    return %arg0, %c0_i32 : i32, i32
  }
  func.func @transform_5(%arg0: i32, %arg1: i32) -> (i32, i32) {
    %c0_i32 = arith.constant 0 : i32
    %c0_i32_0 = arith.constant 0 : i32
    return %arg0, %c0_i32 : i32, i32
  }
}

module attributes {stable_mosaic.version = 11 : i64} {
  func.func @_bn_apply_kernel(%arg0: i32, %arg1: memref<32x128xbf16, #tpu.memory_space<vmem>>, %arg2: memref<8x128xf32, #tpu.memory_space<vmem>>, %arg3: memref<32x128xf32, #tpu.memory_space<vmem>>, %arg4: memref<32x128xbf16, #tpu.memory_space<vmem>>) attributes {dimension_semantics = [#tpu.dimension_semantics<parallel>], iteration_bounds = array<i64: 1>, scalar_prefetch = 0 : i64, scratch_operands = 0 : i64, tpu.core_type = #tpu.core_type<tc>, window_params = [{transform_indices = @transform_0, window_bounds = array<i64: 32, 128>}, {pipeline_mode = #tpu.pipeline_mode<synchronous>, transform_indices = @transform_1, window_bounds = array<i64: 8, 128>}, {transform_indices = @transform_2, window_bounds = array<i64: 32, 128>}, {transform_indices = @transform_3, window_bounds = array<i64: 32, 128>}]} {
    %c0 = arith.constant 0 : index
    %c0_0 = arith.constant 0 : index
    %0 = vector.load %arg2[%c0, %c0_0] : memref<8x128xf32, #tpu.memory_space<vmem>>, vector<1x128xf32>
    %c1 = arith.constant 1 : index
    %c0_1 = arith.constant 0 : index
    %1 = vector.load %arg2[%c1, %c0_1] : memref<8x128xf32, #tpu.memory_space<vmem>>, vector<1x128xf32>
    %c0_2 = arith.constant 0 : index
    %c0_3 = arith.constant 0 : index
    %2 = vector.load %arg1[%c0_2, %c0_3] : memref<32x128xbf16, #tpu.memory_space<vmem>>, vector<32x128xbf16>
    %3 = arith.extf %2 : vector<32x128xbf16> to vector<32x128xf32>
    %4 = vector.broadcast %0 : vector<1x128xf32> to vector<32x128xf32>
    %5 = arith.mulf %3, %4 : vector<32x128xf32>
    %6 = vector.broadcast %1 : vector<1x128xf32> to vector<32x128xf32>
    %7 = arith.addf %5, %6 : vector<32x128xf32>
    %c0_4 = arith.constant 0 : index
    %c0_5 = arith.constant 0 : index
    %8 = vector.load %arg3[%c0_4, %c0_5] : memref<32x128xf32, #tpu.memory_space<vmem>>, vector<32x128xf32>
    tpu.vector_store %arg3[%c0_4, %c0_5], %7 {strides = array<i32>} : memref<32x128xf32, #tpu.memory_space<vmem>>, vector<32x128xf32>,
    %9 = arith.truncf %7 : vector<32x128xf32> to vector<32x128xbf16>
    %c0_6 = arith.constant 0 : index
    %c0_7 = arith.constant 0 : index
    %10 = vector.load %arg4[%c0_6, %c0_7] : memref<32x128xbf16, #tpu.memory_space<vmem>>, vector<32x128xbf16>
    tpu.vector_store %arg4[%c0_6, %c0_7], %9 {strides = array<i32>} : memref<32x128xbf16, #tpu.memory_space<vmem>>, vector<32x128xbf16>,
    return
  }
  func.func @transform_0(%arg0: i32) -> (i32, i32) {
    %c0_i32 = arith.constant 0 : i32
    %c0_i32_0 = arith.constant 0 : i32
    return %arg0, %c0_i32 : i32, i32
  }
  func.func @transform_1(%arg0: i32) -> (i32, i32) {
    %c0_i32 = arith.constant 0 : i32
    %c0_i32_0 = arith.constant 0 : i32
    %c0_i32_1 = arith.constant 0 : i32
    return %c0_i32, %c0_i32_0 : i32, i32
  }
  func.func @transform_2(%arg0: i32) -> (i32, i32) {
    %c0_i32 = arith.constant 0 : i32
    %c0_i32_0 = arith.constant 0 : i32
    return %arg0, %c0_i32 : i32, i32
  }
  func.func @transform_3(%arg0: i32) -> (i32, i32) {
    %c0_i32 = arith.constant 0 : i32
    %c0_i32_0 = arith.constant 0 : i32
    return %arg0, %c0_i32 : i32, i32
  }
}

module attributes {stable_mosaic.version = 11 : i64} {
  func.func @_bn_apply_kernel(%arg0: i32, %arg1: memref<32x128xbf16, #tpu.memory_space<vmem>>, %arg2: memref<8x128xf32, #tpu.memory_space<vmem>>, %arg3: memref<32x128xf32, #tpu.memory_space<vmem>>, %arg4: memref<32x128xbf16, #tpu.memory_space<vmem>>) attributes {dimension_semantics = [#tpu.dimension_semantics<parallel>], iteration_bounds = array<i64: 1>, scalar_prefetch = 0 : i64, scratch_operands = 0 : i64, tpu.core_type = #tpu.core_type<tc>, window_params = [{transform_indices = @transform_0, window_bounds = array<i64: 32, 128>}, {pipeline_mode = #tpu.pipeline_mode<synchronous>, transform_indices = @transform_1, window_bounds = array<i64: 8, 128>}, {transform_indices = @transform_2, window_bounds = array<i64: 32, 128>}, {transform_indices = @transform_3, window_bounds = array<i64: 32, 128>}]} {
    %c0 = arith.constant 0 : index
    %c0_0 = arith.constant 0 : index
    %0 = vector.load %arg2[%c0, %c0_0] : memref<8x128xf32, #tpu.memory_space<vmem>>, vector<1x128xf32>
    %c1 = arith.constant 1 : index
    %c0_1 = arith.constant 0 : index
    %1 = vector.load %arg2[%c1, %c0_1] : memref<8x128xf32, #tpu.memory_space<vmem>>, vector<1x128xf32>
    %c0_2 = arith.constant 0 : index
    %c0_3 = arith.constant 0 : index
    %2 = vector.load %arg1[%c0_2, %c0_3] : memref<32x128xbf16, #tpu.memory_space<vmem>>, vector<32x128xbf16>
    %3 = arith.extf %2 : vector<32x128xbf16> to vector<32x128xf32>
    %4 = vector.broadcast %0 : vector<1x128xf32> to vector<32x128xf32>
    %5 = arith.mulf %3, %4 : vector<32x128xf32>
    %6 = vector.broadcast %1 : vector<1x128xf32> to vector<32x128xf32>
    %7 = arith.addf %5, %6 : vector<32x128xf32>
    %c0_4 = arith.constant 0 : index
    %c0_5 = arith.constant 0 : index
    %8 = vector.load %arg3[%c0_4, %c0_5] : memref<32x128xf32, #tpu.memory_space<vmem>>, vector<32x128xf32>
    tpu.vector_store %arg3[%c0_4, %c0_5], %7 {strides = array<i32>} : memref<32x128xf32, #tpu.memory_space<vmem>>, vector<32x128xf32>,
    %9 = arith.truncf %7 : vector<32x128xf32> to vector<32x128xbf16>
    %c0_6 = arith.constant 0 : index
    %c0_7 = arith.constant 0 : index
    %10 = vector.load %arg4[%c0_6, %c0_7] : memref<32x128xbf16, #tpu.memory_space<vmem>>, vector<32x128xbf16>
    tpu.vector_store %arg4[%c0_6, %c0_7], %9 {strides = array<i32>} : memref<32x128xbf16, #tpu.memory_space<vmem>>, vector<32x128xbf16>,
    return
  }
  func.func @transform_0(%arg0: i32) -> (i32, i32) {
    %c0_i32 = arith.constant 0 : i32
    %c0_i32_0 = arith.constant 0 : i32
    return %arg0, %c0_i32 : i32, i32
  }
  func.func @transform_1(%arg0: i32) -> (i32, i32) {
    %c0_i32 = arith.constant 0 : i32
    %c0_i32_0 = arith.constant 0 : i32
    %c0_i32_1 = arith.constant 0 : i32
    return %c0_i32, %c0_i32_0 : i32, i32
  }
  func.func @transform_2(%arg0: i32) -> (i32, i32) {
    %c0_i32 = arith.constant 0 : i32
    %c0_i32_0 = arith.constant 0 : i32
    return %arg0, %c0_i32 : i32, i32
  }
  func.func @transform_3(%arg0: i32) -> (i32, i32) {
    %c0_i32 = arith.constant 0 : i32
    %c0_i32_0 = arith.constant 0 : i32
    return %arg0, %c0_i32 : i32, i32
  }
}

</mosaic_0001>

<bundles_post_ra>
// kernel: gin_node_weight_encoder.5
= control target key start
LH: loop header
LB: loop body
LE: loop exit
PB: predicated region body
PF: predicated region fallthrough
CT: control target
= control target key end

     0   :  { %s151_s0 = inlined_call_operand.vmem [shape: bf16[32,128], index: 0, kind: input, shape index: {}]   ;;  %s152_s1 = inlined_call_operand.vmem [shape: f32[8,128], index: 1, kind: input, shape index: {}]   ;;  %s153_s2 = inlined_call_operand.vmem [shape: f32[32,128], index: 2, kind: output, shape index: {0}]   ;;  %s154_s3 = inlined_call_operand.vmem [shape: bf16[32,128], index: 3, kind: output, shape index: {1}]  }
   0x1   :  { %v71_v0 = vld [vmem:[%s152_s1] ss:$0 sm:$0xff]  ;;  %v99_v4 = vld [vmem:[%s151_s0 + $0x8] sm:$0xff]   ;;  %v72_v5 = vld [vmem:[%s152_s1 + $0x1] ss:$0 sm:$0xff] }
   0x2   :  { %v82_v1 = vld [vmem:[%s151_s0] sm:$0xff]   ;;  %v87_v6 = vunpack.c.l.bf16 %v99_v4  ;;  %v88_v7 = vunpack.c.h.bf16 %v99_v4 }
   0x3   :  { %v83_v2 = vunpack.c.l.bf16 %v82_v1  ;;  %v84_v3 = vunpack.c.h.bf16 %v82_v1 }
   0x4   :  { %v29_v10 = vmul.f32 %v87_v6, %v71_v0  ;;  %v30_v11 = vmul.f32 %v88_v7, %v71_v0 }
   0x5   :  { %v27_v8 = vmul.f32 %v83_v2, %v71_v0  ;;  %v28_v9 = vmul.f32 %v84_v3, %v71_v0 }
   0x6   :  { %v37_v14 = vadd.f32 %v72_v5, %v29_v10  ;;  %v38_v15 = vadd.f32 %v72_v5, %v30_v11 }
   0x7   :  { %v35_v12 = vadd.f32 %v72_v5, %v27_v8  ;;  %v36_v13 = vadd.f32 %v72_v5, %v28_v9 }
   0x8   :  { %41 = vst [vmem:[%s153_s2 + $0x10] sm:$0xff] %v37_v14  ;;  %42 = vst [vmem:[%s153_s2 + $0x18] sm:$0xff] %v38_v15  ;;  %v97_v17 = vpack.c.bf16 %v38_v15, %v37_v14 }
   0x9   :  { %39 = vst [vmem:[%s153_s2] sm:$0xff] %v35_v12  ;;  %40 = vst [vmem:[%s153_s2 + $0x8] sm:$0xff] %v36_v13  ;;  %v92_v16 = vpack.c.bf16 %v36_v13, %v35_v12 }
   0xa   :  { %100 = vst [vmem:[%s154_s3 + $0x8] sm:$0xff] %v97_v17  }
   0xb   :  { %93 = vst [vmem:[%s154_s3] sm:$0xff] %v92_v16  }

// kernel: gin_node_weight_encoder.4
= control target key start
LH: loop header
LB: loop body
LE: loop exit
PB: predicated region body
PF: predicated region fallthrough
CT: control target
= control target key end

     0   :  { %vm66_vm0 = vcmask 261120   ;;  %s841_s0 = inlined_call_operand.vmem [shape: bf16[32,128], index: 0, kind: input, shape index: {}]   ;;  %s842_s2 = inlined_call_operand.vmem [shape: s8[32,32], index: 2, kind: input, shape index: {}]   ;;  %s843_s3 = inlined_call_operand.vmem [shape: f32[272,128], index: 3, kind: input, shape index: {}]   ;;  %s844_s1 = inlined_call_operand.vmem [shape: f32[32,128], index: 1, kind: input, shape index: {}]   ;;  %s845_s4 = inlined_call_operand.vmem [shape: bf16[32,128], index: 4, kind: output, shape index: {0}]   ;;  %s846_s5 = inlined_call_operand.vmem [shape: f32[8,128], index: 5, kind: output, shape index: {1}]  }
   0x1   :  { %v663_v0 = vld [vmem:[%s841_s0] sm:$0xff]   ;;  %v664_v1 = vld [vmem:[%s841_s0 + $0x8] sm:$0xff]   ;;  %v147_v13 = vld [vmem:[%s843_s3 + $0x10] sm:$0xff] }
   0x2   :  { %515 = vmatprep.subr.bf16.mxu0 %v663_v0  ;;  %v32_v2 = vld [vmem:[%s842_s2] sm:$0x3]  ;;  %v33_v3 = vld [vmem:[%s842_s2 + $0x2] sm:$0x3]  ;;  %v34_v4 = vld [vmem:[%s842_s2 + $0x4] sm:$0x3] }
   0x3   :  { %516 = vmatpush3.bf16.msra.mxu0 %v663_v0  ;;  %v36_v5 = vunpack.c.l.s8.bf16 %v32_v2  ;;  %v37_v6 = vunpack.c.l.s8.bf16 %v33_v3  ;;  %v35_v7 = vld [vmem:[%s842_s2 + $0x6] sm:$0x3]  ;;  %v38_v8 = vunpack.c.l.s8.bf16 %v34_v4  ;;  %v146_v10 = vld [vmem:[%s843_s3 + $0x8] sm:$0xff]  ;;  %v148_v14 = vld [vmem:[%s843_s3 + $0x18] sm:$0xff] }
   0x4   :  { %v145_v9 = vld [vmem:[%s843_s3] sm:$0xff]  ;;  %517 = vmatprep.subr.bf16.mxu0 %v664_v1  ;;  %v39_v11 = vunpack.c.l.s8.bf16 %v35_v7  ;;  %v603_v16 = vpack.c.bf16 %v148_v14, %v147_v13  ;;  %v150_v19 = vld [vmem:[%s843_s3 + $0x28] sm:$0xff]  ;;  %v151_v21 = vld [vmem:[%s843_s3 + $0x30] sm:$0xff] }
   0x5   :  { %v599_v12 = vpack.c.bf16 %v146_v10, %v145_v9  ;;  %v444_v15 = vcombine.low %v36_v5, %v37_v6  ;;  %v149_v18 = vld [vmem:[%s843_s3 + $0x20] sm:$0xff]  ;;  %v152_v22 = vld [vmem:[%s843_s3 + $0x38] sm:$0xff]  ;;  %v154_v25 = vld [vmem:[%s843_s3 + $0x48] sm:$0xff] }
   0x6   :  { %v445_v17 = vcombine.low %v38_v8, %v39_v11  ;;  %v607_v20 = vpack.c.bf16 %v150_v19, %v149_v18  ;;  %v611_v23 = vpack.c.bf16 %v152_v22, %v151_v21  ;;  %v153_v24 = vld [vmem:[%s843_s3 + $0x40] sm:$0xff]  ;;  %v155_v27 = vld [vmem:[%s843_s3 + $0x50] sm:$0xff]  ;;  %v156_v28 = vld [vmem:[%s843_s3 + $0x58] sm:$0xff] }
   0x7   :  { %600 = vmatprep.subr.bf16.mxu1 %v599_v12  ;;  %518 = vmatpush3.bf16.msra.mxu0 %v664_v1  ;;  %v615_v26 = vpack.c.bf16 %v154_v25, %v153_v24  ;;  %v619_v29 = vpack.c.bf16 %v156_v28, %v155_v27  ;;  %v157_v30 = vld [vmem:[%s843_s3 + $0x60] sm:$0xff]  ;;  %v158_v31 = vld [vmem:[%s843_s3 + $0x68] sm:$0xff]  ;;  %v159_v33 = vld [vmem:[%s843_s3 + $0x70] sm:$0xff] }
   0x8   :  { %519 = vmatprep.mubr.msk.bf16.mxu0 %vm66_vm0, %v444_v15  ;;  %602 = vmatpush3.bf16.msra.mxu1 %v599_v12  ;;  %v623_v32 = vpack.c.bf16 %v158_v31, %v157_v30  ;;  %v160_v34 = vld [vmem:[%s843_s3 + $0x78] sm:$0xff]  ;;  %v162_v36 = vld [vmem:[%s843_s3 + $0x88] sm:$0xff]  ;;  %v163_v37 = vld [vmem:[%s843_s3 + $0x90] sm:$0xff] }
   0x9   :  { %604 = vmatprep.subr.bf16.mxu1 %v603_v16  ;;  %v627_v35 = vpack.c.bf16 %v160_v34, %v159_v33  ;;  %v164_v38 = vld [vmem:[%s843_s3 + $0x98] sm:$0xff]  ;;  %v631_v39 = vpack.c.bf16 %v163_v37, %v162_v36  ;;  %v165_v40 = vld [vmem:[%s843_s3 + $0xa0] sm:$0xff]  ;;  %v166_v42 = vld [vmem:[%s843_s3 + $0xa8] sm:$0xff] }
   0xa   :  { %520 = vmatmul.mubr.msk.bf16.vlgmr.msra.gmra.mrb[0].mxu0 %vm66_vm0, %v445_v17  ;;  %v635_v41 = vpack.c.bf16 %v165_v40, %v164_v38  ;;  %v167_v43 = vld [vmem:[%s843_s3 + $0xb0] sm:$0xff]  ;;  %v168_v45 = vld [vmem:[%s843_s3 + $0xb8] sm:$0xff]  ;;  %v169_v46 = vld [vmem:[%s843_s3 + $0xc0] sm:$0xff] }
   0xb   :  { %632 = vmatprep.subr.bf16.mxu0 %v631_v39  ;;  %v639_v44 = vpack.c.bf16 %v167_v43, %v166_v42  ;;  %v643_v47 = vpack.c.bf16 %v169_v46, %v168_v45  ;;  %v170_v48 = vld [vmem:[%s843_s3 + $0xc8] sm:$0xff]  ;;  %v171_v49 = vld [vmem:[%s843_s3 + $0xd0] sm:$0xff]  ;;  %v172_v51 = vld [vmem:[%s843_s3 + $0xd8] sm:$0xff] }
   0xc   :  { %606 = vmatpush3.bf16.msra.mxu1 %v603_v16  ;;  %634 = vmatpush3.bf16.msra.mxu0 %v631_v39  ;;  %v647_v50 = vpack.c.bf16 %v171_v49, %v170_v48  ;;  %v173_v52 = vld [vmem:[%s843_s3 + $0xe0] sm:$0xff]  ;;  %v174_v54 = vld [vmem:[%s843_s3 + $0xe8] sm:$0xff]  ;;  %v175_v55 = vld [vmem:[%s843_s3 + $0xf0] sm:$0xff] }
   0xd   :  { %608 = vmatprep.subr.bf16.mxu1 %v607_v20  ;;  %636 = vmatprep.subr.bf16.mxu0 %v635_v41  ;;  %v651_v53 = vpack.c.bf16 %v173_v52, %v172_v51  ;;  %v655_v56 = vpack.c.bf16 %v175_v55, %v174_v54  ;;  %v137_v57 = vld [vmem:[%s844_s1] sm:$0xff]  ;;  %v138_v60 = vld [vmem:[%s844_s1 + $0x8] sm:$0xff]  ;;  %v139_v61 = vld [vmem:[%s844_s1 + $0x10] sm:$0xff] }
   0xe   :  { %v140_v3 = vld [vmem:[%s844_s1 + $0x18] sm:$0xff]  ;;  %v177_v6 = vld [vmem:[%s843_s3 + $0x100] sm:$0xff]  ;;  %v451_v21 = vld [vmem:[%s843_s3 + $0x108] ss:$0 sm:$0xff] }
   0xf   :  { %v176_v5 = vld [vmem:[%s843_s3 + $0xf8] sm:$0xff]  ;;  %v450_v8 = vld [vmem:[%s843_s3 + $0x80] ss:$0 sm:$0xff] }
  0x10   :  { %610 = vmatpush3.bf16.msra.mxu1 %v607_v20  ;;  %638 = vmatpush3.bf16.msra.mxu0 %v635_v41  ;;  %v659_v7 = vpack.c.bf16 %v177_v6, %v176_v5 }
  0x11   :  { %612 = vmatprep.subr.bf16.mxu1 %v611_v23  ;;  %640 = vmatprep.subr.bf16.mxu0 %v639_v44 }
  0x14   :  { %614 = vmatpush3.bf16.msra.mxu1 %v611_v23  ;;  %642 = vmatpush3.bf16.msra.mxu0 %v639_v44 }
  0x15   :  { %616 = vmatprep.subr.bf16.mxu1 %v615_v26  ;;  %644 = vmatprep.subr.bf16.mxu0 %v643_v47 }
  0x18   :  { %618 = vmatpush3.bf16.msra.mxu1 %v615_v26  ;;  %646 = vmatpush3.bf16.msra.mxu0 %v643_v47 }
  0x19   :  { %620 = vmatprep.subr.bf16.mxu1 %v619_v29  ;;  %648 = vmatprep.subr.bf16.mxu0 %v647_v50 }
  0x1c   :  { %622 = vmatpush3.bf16.msra.mxu1 %v619_v29  ;;  %650 = vmatpush3.bf16.msra.mxu0 %v647_v50 }
  0x1d   :  { %624 = vmatprep.subr.bf16.mxu1 %v623_v32  ;;  %652 = vmatprep.subr.bf16.mxu0 %v651_v53 }
  0x20   :  { %626 = vmatpush3.bf16.msra.mxu1 %v623_v32  ;;  %654 = vmatpush3.bf16.msra.mxu0 %v651_v53 }
  0x21   :  { %628 = vmatprep.subr.bf16.mxu1 %v627_v35  ;;  %656 = vmatprep.subr.bf16.mxu0 %v655_v56 }
  0x24   :  { %630 = vmatpush3.bf16.msra.mxu1 %v627_v35  ;;  %658 = vmatpush3.bf16.msra.mxu0 %v655_v56 }
  0x25   :  { %660 = vmatprep.subr.bf16.mxu0 %v659_v7 }
  0x28   :  { %662 = vmatpush3.bf16.msra.mxu0 %v659_v7 }
  0xdd   :  { %v521_v58 = vpop.f32.mrb[0].mxu0 }
  0xde   :  { %v107_v59 = vpop.f32.mrb[1].mxu0  ;;  %v143_v2 = vadd.f32 %v521_v58, %v139_v61 }
  0xdf   :  { %v522_v62 = vpop.f32.mrb[2].mxu0  ;;  %v141_v63 = vadd.f32 %v137_v57, %v107_v59 }
  0xe0   :  { %v110_v0 = vpop.f32.mrb[3].mxu0  ;;  %v144_v4 = vadd.f32 %v522_v62, %v140_v3 }
  0xe1   :  { %v142_v1 = vadd.f32 %v138_v60, %v110_v0  ;;  %555 = vmatprep.mubr.f32.mxu1 %v141_v63 }
  0xe3   :  { %556 = vmatmul.mubr.f32.vlgmr.msra.gmra.mrb[0].mxu1 %v142_v1 }
  0xe4   :  { %558 = vmatprep.mubr.f32.mxu1 %v143_v2 }
  0xe7   :  { %559 = vmatmul.mubr.f32.gmra.mrb[2].mxu1 %v144_v4 }
 0x1b6   :  { %v557_v9 = vpop.f32.mrb[0].mxu1 }
 0x1b7   :  { %v255_v10 = vadd.f32 %v557_v9, %v450_v8  ;;  %v249_v11 = vpop.f32.mrb[1].mxu1 }
 0x1b8   :  { %v250_v12 = vadd.f32 %v450_v8, %v249_v11 }
 0x1b9   :  { %v269_v15 = vmax.f32 %v255_v10, 0.0 }
 0x1ba   :  { %v268_v13 = vmax.f32 %v250_v12, 0.0  ;;  %v560_v14 = vpop.f32.mrb[2].mxu1 }
 0x1bb   :  { %v265_v16 = vadd.f32 %v560_v14, %v450_v8  ;;  %v259_v17 = vpop.f32.mrb[3].mxu1 }
 0x1bc   :  { %v260_v18 = vadd.f32 %v450_v8, %v259_v17  ;;  %593 = vmatprep.mubr.f32.mxu0 %v268_v13 }
 0x1bd   :  { %594 = vmatmul.mubr.f32.vlgmr.msra.gmra.mrb[4].mxu0 %v269_v15  ;;  %v271_v20 = vmax.f32 %v265_v16, 0.0 }
 0x1be   :  { %v270_v19 = vmax.f32 %v260_v18, 0.0 }
 0x1c0   :  { %596 = vmatprep.mubr.f32.mxu0 %v270_v19 }
 0x1c1   :  { %597 = vmatmul.mubr.f32.gmra.mrb[6].mxu0 %v271_v20 }
 0x290   :  { %v595_v22 = vpop.f32.mrb[4].mxu0 }
 0x291   :  { %v348_v23 = vadd.f32 %v595_v22, %v451_v21  ;;  %v342_v24 = vpop.f32.mrb[5].mxu0 }
 0x292   :  { %v343_v25 = vadd.f32 %v451_v21, %v342_v24 }
 0x293   :  { %v362_v26 = vmax.f32 %v348_v23, 0.0 }
 0x294   :  { %v361_v27 = vmax.f32 %v343_v25, 0.0  ;;  %v598_v28 = vpop.f32.mrb[6].mxu0 }
 0x295   :  { %v423_v29 = vmul.f32 %v362_v26, %v362_v26  ;;  %v358_v30 = vadd.f32 %v598_v28, %v451_v21  ;;  %v352_v31 = vpop.f32.mrb[7].mxu0 }
 0x296   :  { %v463_v32 = vpack.c.bf16 %v362_v26, %v361_v27  ;;  %v412_v33 = vadd.f32 %v362_v26, %v361_v27  ;;  %v422_v34 = vmul.f32 %v361_v27, %v361_v27  ;;  %v353_v35 = vadd.f32 %v451_v21, %v352_v31 }
 0x297   :  { %v364_v36 = vmax.f32 %v358_v30, 0.0 }
 0x298   :  { %v415_v37 = vrot.slane %v412_v33, 4  ;;  %v426_v38 = vadd.f32 %v423_v29, %v422_v34  ;;  %v363_v39 = vmax.f32 %v353_v35, 0.0  ;;  %464 = vst [vmem:[%s845_s4] sm:$0xff] %v463_v32  }
 0x29a   :  { %v416_v40 = vadd.f32 %v415_v37, %v412_v33  ;;  %v429_v41 = vrot.slane %v426_v38, 4  ;;  %v468_v42 = vpack.c.bf16 %v364_v36, %v363_v39 }
 0x29c   :  { %v417_v43 = vrot.slane %v416_v40, 2  ;;  %v430_v44 = vadd.f32 %v429_v41, %v426_v38  ;;  %470 = vst [vmem:[%s845_s4 + $0x8] sm:$0xff] %v468_v42  }
 0x29e   :  { %v418_v45 = vadd.f32 %v417_v43, %v416_v40  ;;  %v431_v46 = vrot.slane %v430_v44, 2 }
 0x2a0   :  { %v419_v47 = vrot.slane %v418_v45, 1  ;;  %v432_v48 = vadd.f32 %v431_v46, %v430_v44 }
 0x2a2   :  { %v420_v49 = vadd.f32 %v419_v47, %v418_v45  ;;  %v433_v50 = vrot.slane %v432_v48, 1 }
 0x2a4   :  { %421 = vst [vmem:[%s846_s5] sm:$0x1] %v420_v49  ;;  %v434_v51 = vadd.f32 %v433_v50, %v432_v48 }
 0x2a6   :  { %435 = vst [vmem:[%s846_s5 + $0x1] sm:$0x1] %v434_v51 }

// kernel: gin_node_weight_encoder.7
= control target key start
LH: loop header
LB: loop body
LE: loop exit
PB: predicated region body
PF: predicated region fallthrough
CT: control target
= control target key end

     0   :  { %s200_s0 = inlined_call_operand.vmem [shape: bf16[32,128], index: 0, kind: input, shape index: {}]   ;;  %s201_s1 = inlined_call_operand.vmem [shape: f32[8,128], index: 1, kind: input, shape index: {}]   ;;  %s202_s2 = inlined_call_operand.vmem [shape: f32[32,128], index: 2, kind: output, shape index: {0}]   ;;  %s203_s3 = inlined_call_operand.hbm [shape: bf16[32,128], index: 3, kind: output, shape index: {1}]  }
   0x1   :  { %v84_v0 = vld [vmem:[%s201_s1] ss:$0 sm:$0xff]  ;;  %v112_v4 = vld [vmem:[%s200_s0 + $0x8] sm:$0xff]  }
   0x2   :  { %v95_v1 = vld [vmem:[%s200_s0] sm:$0xff]  }
   0x3   :  { %v96_v2 = vunpack.c.l.bf16 %v95_v1  ;;  %v97_v3 = vunpack.c.h.bf16 %v95_v1 }
   0x4   :  { %9 = vsyncpa [#allocation3], 0  ;;  %v85_v5 = vld [vmem:[%s201_s1 + $0x1] ss:$0 sm:$0xff]  ;;  %v100_v6 = vunpack.c.l.bf16 %v112_v4  ;;  %v101_v7 = vunpack.c.h.bf16 %v112_v4  ;;  %s141_s20 = smov [#allocation2]  }
   0x5   :  { %v28_v8 = vmul.f32 %v96_v2, %v84_v0  ;;  %v29_v9 = vmul.f32 %v97_v3, %v84_v0  ;;  %s71_s21 = sshll.u32 %s141_s20, 4  ;;  %s72_s21 = int_to_ptr.vmem [resolvable:$true] %s71_s21 }
   0x6   :  { %v30_v10 = vmul.f32 %v100_v6, %v84_v0  ;;  %v31_v11 = vmul.f32 %v101_v7, %v84_v0  ;;  %s117_s28 = scalar_lea.vmem %s72_s21, 256  ;;  %p122_p1 = scmp.lt.s32.totalorder %s72_s21, %s72_s21 }
   0x7   :  { %v36_v12 = vadd.f32 %v85_v5, %v28_v8  ;;  %v37_v13 = vadd.f32 %v85_v5, %v29_v9  ;;  %p118_p0 = scmp.ne.s32.totalorder %s72_s21, %s117_s28  ;;  %p123_p2 = scmp.lt.s32.totalorder %s117_s28, %s117_s28 }
   0x8   :  { %v38_v14 = vadd.f32 %v85_v5, %v30_v10  ;;  %v39_v15 = vadd.f32 %v85_v5, %v31_v11 }
   0x9   :  { %v105_v16 = vpack.c.bf16 %v37_v13, %v36_v12  ;;  %40 = vst [vmem:[%s202_s2] sm:$0xff] %v36_v12  ;;  %41 = vst [vmem:[%s202_s2 + $0x8] sm:$0xff] %v37_v13  ;;  %p124_p3 = por %p123_p2, %p122_p1 }
   0xa   :  { %v110_v17 = vpack.c.bf16 %v39_v15, %v38_v14  ;;  %42 = vst [vmem:[%s202_s2 + $0x10] sm:$0xff] %v38_v14  ;;  %43 = vst [vmem:[%s202_s2 + $0x18] sm:$0xff] %v39_v15 }
   0xb   :  { %106 = vst [vmem:[#allocation2] sm:$0xff] %v105_v16   ;;  %p125_p4 = pnand %p124_p3, %p118_p0 }
   0xc   :  { %113 = vst [vmem:[#allocation2 + $0x8] sm:$0xff] %v110_v17  }
   0xd   :  { %128 = shalt.err (!%p125_p4)
}
   0xe   :  { %s129_s4 = scalar_lea.hbm %s203_s3, 256 }
   0xf   :  { %p130_p5 = scmp.ne.s32.totalorder %s203_s3, %s129_s4  ;;  %p133_p6 = scmp.lt.u32.totalorder %s129_s4, %s203_s3 }
  0x11   :  { %p135_p7 = pnand %p133_p6, %p130_p5 }
  0x13   :  { %138 = shalt.err (!%p135_p7)
}
  0x14   :  { %s142_s8 = smov 64   ;;  %s143_s9 = smov 4  }
  0x15   :  { %77 = dma.vmem_to_hbm [thread:$0]  %s72_s21, 256, %s203_s3, [#allocation3], %s142_s8, %s142_s8, %s143_s9  }
  0x16   :  { %139 = dma.done.wait [#allocation3], 256  }
  0x17   :  { %140 = vsyncadd [#allocation3], 4294967040 }
  0x18   :  { %83 = vsyncpa [#allocation3], 1 }

</bundles_post_ra>
